<compile_context>
chip_gen: v7x
topology: tpu7x:2x2x1
jax: 0.10.0
libtpu: 0.0.40
codegen_flags: <defaults>
</compile_context>

<pallas_src>
import functools

import jax
import jax.numpy as jnp
from jax.experimental import pallas as pl
from jax.experimental.pallas import tpu as pltpu

_LANE = 128
_BF16_SUBLANE = 16  # a bf16 vreg packs 16 sublanes


def _round_up(x, m):
    return (x + m - 1) // m * m


def _pad_hidden(H):
    # v6e/v7x MXUs are 256-wide; use the full array when H is big enough.
    if H >= 256:
        return _round_up(H, 256)
    return _round_up(max(H, _LANE), _LANE)


def _vmem_capacity_bytes():
    try:
        cap = getattr(pltpu.get_tpu_info(), "vmem_capacity_bytes", None)
        if cap:
            return int(cap)
    except Exception:
        pass
    return 64 * 1024 * 1024  # conservative default (v7x per-TC VMEM)


def _sentiment_kernel(x_ref, w1_ref, b1_ref, w2_ref, b2_ref, o_ref):
    # fc1 on the MXU: x [tb, H] (cast to bf16 in-kernel) @ w1t [H_in, H_out]
    # (pre-transposed in prepare_params, so no per-step XLU relayout),
    # f32 accumulation.
    xb = x_ref[...].astype(jnp.bfloat16)
    h = jnp.dot(xb, w1_ref[...], preferred_element_type=jnp.float32)
    # bias + ReLU (VPU).
    h = jnp.maximum(h + b1_ref[...], 0.0)
    # fc2 on the VPU/XLU: broadcast-multiply by the [1, H] weight row, lane-reduce.
    logits = jnp.sum(h * w2_ref[...], axis=-1, keepdims=True) + b2_ref[0, 0]
    # Numerically stable sigmoid; exp + reciprocal use the EUP slot (exact recip:
    # the kernel is HBM-bound, precision is free).
    z = jnp.exp(-jnp.abs(logits))
    sig = jnp.where(logits >= 0.0, 1.0, z) * pl.reciprocal(1.0 + z, approx=False)
    o_ref[...] = sig.astype(o_ref.dtype)


def prepare_params(w1, b1, w2, b2):
    """One-time weight prep (do at model-load time, NOT per forward call).

    w1: [H, H] (PyTorch [out, in]); b1: [H]; w2: [1, H]; b2: [1].
    Pads H to a lane/MXU-friendly size, casts the matmul weight to bf16 and
    transposes it to [in, out]. The zero padding is mathematically inert.
    """
    H = int(w1.shape[1])
    H_pad = _pad_hidden(H)
    w1t = (jnp.zeros((H_pad, H_pad), jnp.bfloat16)
           .at[:H, :H].set(jnp.asarray(w1).T.astype(jnp.bfloat16)))
    b1_p = jnp.zeros((1, H_pad), jnp.float32).at[0, :H].set(
        jnp.asarray(b1, jnp.float32))
    w2_p = jnp.zeros((1, H_pad), jnp.float32).at[0, :H].set(
        jnp.asarray(w2, jnp.float32).reshape(-1))
    b2_p = jnp.asarray(b2, jnp.float32).reshape(1, 1)
    return {"w1t": w1t, "b1": b1_p, "w2": w2_p, "b2": b2_p,
            "hidden": H, "hidden_pad": H_pad}


def _choose_batch_tile(B, H_pad, block_b, vmem_cap):
    tb = min(_round_up(block_b, _BF16_SUBLANE),
             _round_up(max(B, _BF16_SUBLANE), _BF16_SUBLANE))
    # VMEM budget: keep the batch-tile footprint within ~half of physical VMEM
    # after the single-buffered resident weight + bias rows are accounted for.
    per_row = H_pad * (2 * 4      # x tile (f32 worst case), double-buffered
                       + 2        # in-kernel bf16 cast of x
                       + 2 * 4    # f32 `h` intermediate (+ headroom)
                       ) + 2 * 4  # out tile (f32), double-buffered
    budget = vmem_cap // 2 - H_pad * H_pad * 2 - 4 * H_pad * 4
    if budget >= per_row * _BF16_SUBLANE:
        tb = min(tb, budget // per_row // _BF16_SUBLANE * _BF16_SUBLANE)
    tb = max(tb, _BF16_SUBLANE)
    # v7x has 2 TensorCores: keep at least 2 grid steps when B allows it so the
    # "parallel" batch axis actually shards across both cores.
    if B >= 2 * _BF16_SUBLANE:
        tb = min(tb, _round_up((B + 1) // 2, _BF16_SUBLANE))
    return tb


def sentiment_classifier_prepared(x, params, *, block_b=2048):
    """Forward pass of SentimentClassifier using pre-prepared weights.

    Returns sigmoid(fc2(relu(fc1(x)))): [B, 1] float32.
    """
    w1t, b1_p, w2_p, b2_p = params["w1t"], params["b1"], params["w2"], params["b2"]
    H, H_pad = params["hidden"], params["hidden_pad"]
    B = x.shape[0]
    assert x.shape[1] == H, "x feature dim must match hidden_size"

    vmem_cap = _vmem_capacity_bytes()
    tb = _choose_batch_tile(B, H_pad, block_b, vmem_cap)

    if H == H_pad and B % tb == 0:
        # Fast path: no per-call pad/cast pass for x; the kernel casts to bf16.
        x_p, B_pad = x, B
    else:
        # Misaligned shapes: zero-pad (inert) and fold the bf16 cast into the pad.
        B_pad = _round_up(max(B, tb), tb)
        x_p = (jnp.zeros((B_pad, H_pad), jnp.bfloat16)
               .at[:B, :H].set(x.astype(jnp.bfloat16)))

    grid = (B_pad // tb,)

    x_bytes = x_p.dtype.itemsize
    vmem_bytes = (2 * tb * H_pad * x_bytes   # x tile, double-buffered
                  + tb * H_pad * 2           # in-kernel bf16 copy of x
                  + 2 * tb * H_pad * 4       # f32 h intermediate (+ headroom)
                  + 2 * tb * 4               # out tile (f32), double-buffered
                  + H_pad * H_pad * 2        # w1 (bf16), single-buffered resident
                  + 2 * H_pad * 4)           # b1 + w2 rows (f32)
    vmem_limit = int(min(max(2 * vmem_bytes, 16 * 1024 * 1024),
                         int(vmem_cap * 0.75)))

    def _run(single_buffer_weights):
        # Constant-index blocks need only one buffer (their index_map never moves).
        wmode = pl.Buffered(1) if single_buffer_weights else None
        return pl.pallas_call(
            _sentiment_kernel,
            out_shape=jax.ShapeDtypeStruct((B_pad, 1), jnp.float32),
            grid=grid,
            in_specs=[
                pl.BlockSpec((tb, H_pad), lambda i: (i, 0)),        # x: batch-tiled
                pl.BlockSpec((H_pad, H_pad), lambda i: (0, 0),
                             pipeline_mode=wmode),                  # w1t resident
                pl.BlockSpec((1, H_pad), lambda i: (0, 0),
                             pipeline_mode=wmode),                  # b1 row
                pl.BlockSpec((1, H_pad), lambda i: (0, 0),
                             pipeline_mode=wmode),                  # w2 row (VPU fc2)
                pl.BlockSpec(memory_space=pltpu.MemorySpace.SMEM),  # b2 scalar
            ],
            out_specs=pl.BlockSpec((tb, 1), lambda i: (i, 0)),
            compiler_params=pltpu.CompilerParams(
                dimension_semantics=("parallel",),
                vmem_limit_bytes=vmem_limit,
            ),
        )(x_p, w1t, b1_p, w2_p, b2_p)

    try:
        out = _run(True)
    except Exception:
        # Fallback for jax versions where pl.Buffered(1) is not accepted.
        out = _run(False)
    return out[:B]


def sentiment_classifier(x, w1, b1, w2, b2, *, block_b=2048):
    """Convenience wrapper that preps weights per call.

    In steady state call prepare_params() once and reuse it with
    sentiment_classifier_prepared() to avoid re-padding/casting the weights
    on every invocation.
    """
    return sentiment_classifier_prepared(
        x, prepare_params(w1, b1, w2, b2), block_b=block_b)


if __name__ == "__main__":
    key = jax.random.PRNGKey(0)
    kx, k1, k2, k3, k4 = jax.random.split(key, 5)

    batch, hidden = 8, 32
    x = jax.random.normal(kx, (batch, hidden), jnp.float32)
    bound = 1.0 / float(hidden) ** 0.5
    w1 = jax.random.uniform(k1, (hidden, hidden), jnp.float32, -bound, bound)
    b1 = jax.random.uniform(k2, (hidden,), jnp.float32, -bound, bound)
    w2 = jax.random.uniform(k3, (1, hidden), jnp.float32, -bound, bound)
    b2 = jax.random.uniform(k4, (1,), jnp.float32, -bound, bound)

    params = prepare_params(w1, b1, w2, b2)      # one-time weight prep
    y = sentiment_classifier_prepared(x, params)
    y = jax.block_until_ready(y)
    assert y.shape == (batch, 1)

    # Reference matched to the kernel's fc1 precision (bf16 operands, f32 accum).
    h_ref = jnp.maximum(
        jnp.dot(x.astype(jnp.bfloat16), w1.astype(jnp.bfloat16).T,
                preferred_element_type=jnp.float32) + b1, 0.0)
    ref_bf16 = jax.nn.sigmoid(h_ref @ w2.T + b2)
    assert jnp.allclose(y, ref_bf16, atol=2e-3), "mismatch vs bf16-matched reference"

    # Full f32 reference of the original module (looser: fc1 ran in bf16).
    ref_f32 = jax.nn.sigmoid(jnp.maximum(x @ w1.T + b1, 0.0) @ w2.T + b2)
    assert jnp.allclose(y, ref_f32, atol=3e-2), "mismatch vs f32 reference"

    print("KERNEL_OK")
</pallas_src>

<mosaic_0001>
module attributes {stable_mosaic.version = 11 : i64} {
  func.func @_sentiment_kernel(%arg0: i32, %arg1: memref<16x128xbf16, #tpu.memory_space<vmem>>, %arg2: memref<128x128xbf16, #tpu.memory_space<vmem>>, %arg3: memref<1x128xf32, #tpu.memory_space<vmem>>, %arg4: memref<1x128xf32, #tpu.memory_space<vmem>>, %arg5: memref<1x1xf32, #tpu.memory_space<smem>>, %arg6: memref<16x1xf32, #tpu.memory_space<vmem>>) attributes {dimension_semantics = [#tpu.dimension_semantics<parallel>], iteration_bounds = array<i64: 1>, scalar_prefetch = 0 : i64, scratch_operands = 0 : i64, tpu.core_type = #tpu.core_type<tc>, window_params = [{transform_indices = @transform_0, window_bounds = array<i64: 16, 128>}, {pipeline_mode = #tpu.pipeline_mode<synchronous>, transform_indices = @transform_1, window_bounds = array<i64: 128, 128>}, {pipeline_mode = #tpu.pipeline_mode<synchronous>, transform_indices = @transform_2, window_bounds = array<i64: 1, 128>}, {pipeline_mode = #tpu.pipeline_mode<synchronous>, transform_indices = @transform_3, window_bounds = array<i64: 1, 128>}, {transform_indices = @transform_4, window_bounds = array<i64: 1, 1>}, {transform_indices = @transform_5, window_bounds = array<i64: 16, 1>}]} {
    %c0 = arith.constant 0 : index
    %c0_0 = arith.constant 0 : index
    %0 = vector.load %arg1[%c0, %c0_0] : memref<16x128xbf16, #tpu.memory_space<vmem>>, vector<16x128xbf16>
    %c0_1 = arith.constant 0 : index
    %c0_2 = arith.constant 0 : index
    %1 = vector.load %arg2[%c0_1, %c0_2] : memref<128x128xbf16, #tpu.memory_space<vmem>>, vector<128x128xbf16>
    %cst = arith.constant dense<0.000000e+00> : vector<16x128xf32>
    %2 = tpu.matmul %0, %1, %cst {dimension_numbers = #tpu.dot_dimension_numbers<[1], [0], [0], [1], [0, 0, 1, 1], [], []>} : vector<16x128xbf16>, vector<128x128xbf16>, vector<16x128xf32> -> vector<16x128xf32>
    %c0_3 = arith.constant 0 : index
    %c0_4 = arith.constant 0 : index
    %3 = vector.load %arg3[%c0_3, %c0_4] : memref<1x128xf32, #tpu.memory_space<vmem>>, vector<1x128xf32>
    %4 = vector.broadcast %3 : vector<1x128xf32> to vector<16x128xf32>
    %5 = arith.addf %2, %4 : vector<16x128xf32>
    %cst_5 = arith.constant 0.000000e+00 : f32
    %6 = vector.broadcast %cst_5 : f32 to vector<16x128xf32>
    %7 = arith.maximumf %5, %6 : vector<16x128xf32>
    %c0_6 = arith.constant 0 : index
    %c0_7 = arith.constant 0 : index
    %8 = vector.load %arg4[%c0_6, %c0_7] : memref<1x128xf32, #tpu.memory_space<vmem>>, vector<1x128xf32>
    %9 = vector.broadcast %8 : vector<1x128xf32> to vector<16x128xf32>
    %10 = arith.mulf %7, %9 : vector<16x128xf32>
    %cst_8 = arith.constant dense<0.000000e+00> : vector<16xf32>
    %11 = vector.multi_reduction <add>, %10, %cst_8 [1] : vector<16x128xf32> to vector<16xf32>
    %12 = vector.shape_cast %11 : vector<16xf32> to vector<16x1xf32>
    %c0_9 = arith.constant 0 : index
    %c0_10 = arith.constant 0 : index
    %13 = memref.load %arg5[%c0_9, %c0_10] : memref<1x1xf32, #tpu.memory_space<smem>>
    %14 = vector.broadcast %13 : f32 to vector<16x1xf32>
    %15 = arith.addf %12, %14 : vector<16x1xf32>
    %16 = math.absf %15 : vector<16x1xf32>
    %cst_11 = arith.constant 0.000000e+00 : f32
    %17 = vector.broadcast %cst_11 : f32 to vector<16x1xf32>
    %18 = arith.subf %17, %16 : vector<16x1xf32>
    %19 = math.exp %18 : vector<16x1xf32>
    %cst_12 = arith.constant 0.000000e+00 : f32
    %20 = vector.broadcast %cst_12 : f32 to vector<16x1xf32>
    %21 = arith.cmpf oge, %15, %20 : vector<16x1xf32>
    %cst_13 = arith.constant 1.000000e+00 : f32
    %22 = vector.broadcast %cst_13 : f32 to vector<16x1xf32>
    %23 = arith.select %21, %22, %19 : vector<16x1xi1>, vector<16x1xf32>
    %cst_14 = arith.constant 1.000000e+00 : f32
    %24 = vector.broadcast %cst_14 : f32 to vector<16x1xf32>
    %25 = arith.addf %24, %19 : vector<16x1xf32>
    %26 = tpu.reciprocal %25 : vector<16x1xf32> -> vector<16x1xf32>
    %27 = arith.mulf %23, %26 : vector<16x1xf32>
    %c0_15 = arith.constant 0 : index
    %c0_16 = arith.constant 0 : index
    %28 = vector.load %arg6[%c0_15, %c0_16] : memref<16x1xf32, #tpu.memory_space<vmem>>, vector<16x1xf32>
    tpu.vector_store %arg6[%c0_15, %c0_16], %27 {strides = array<i32>} : memref<16x1xf32, #tpu.memory_space<vmem>>, vector<16x1xf32>,
    return
  }
  func.func @transform_0(%arg0: i32) -> (i32, i32) {
    %c0_i32 = arith.constant 0 : i32
    %c0_i32_0 = arith.constant 0 : i32
    return %arg0, %c0_i32 : i32, i32
  }
  func.func @transform_1(%arg0: i32) -> (i32, i32) {
    %c0_i32 = arith.constant 0 : i32
    %c0_i32_0 = arith.constant 0 : i32
    %c0_i32_1 = arith.constant 0 : i32
    return %c0_i32, %c0_i32_0 : i32, i32
  }
  func.func @transform_2(%arg0: i32) -> (i32, i32) {
    %c0_i32 = arith.constant 0 : i32
    %c0_i32_0 = arith.constant 0 : i32
    %c0_i32_1 = arith.constant 0 : i32
    return %c0_i32, %c0_i32_0 : i32, i32
  }
  func.func @transform_3(%arg0: i32) -> (i32, i32) {
    %c0_i32 = arith.constant 0 : i32
    %c0_i32_0 = arith.constant 0 : i32
    %c0_i32_1 = arith.constant 0 : i32
    return %c0_i32, %c0_i32_0 : i32, i32
  }
  func.func @transform_4(%arg0: i32) -> (i32, i32) {
    %c0_i32 = arith.constant 0 : i32
    %c0_i32_0 = arith.constant 0 : i32
    %c0_i32_1 = arith.constant 0 : i32
    return %c0_i32, %c0_i32_0 : i32, i32
  }
  func.func @transform_5(%arg0: i32) -> (i32, i32) {
    %c0_i32 = arith.constant 0 : i32
    %c0_i32_0 = arith.constant 0 : i32
    return %arg0, %c0_i32 : i32, i32
  }
}

module attributes {stable_mosaic.version = 11 : i64} {
  func.func @_sentiment_kernel(%arg0: i32, %arg1: memref<16x128xbf16, #tpu.memory_space<vmem>>, %arg2: memref<128x128xbf16, #tpu.memory_space<vmem>>, %arg3: memref<1x128xf32, #tpu.memory_space<vmem>>, %arg4: memref<1x128xf32, #tpu.memory_space<vmem>>, %arg5: memref<1x1xf32, #tpu.memory_space<smem>>, %arg6: memref<16x1xf32, #tpu.memory_space<vmem>>) attributes {dimension_semantics = [#tpu.dimension_semantics<parallel>], iteration_bounds = array<i64: 1>, scalar_prefetch = 0 : i64, scratch_operands = 0 : i64, tpu.core_type = #tpu.core_type<tc>, window_params = [{transform_indices = @transform_0, window_bounds = array<i64: 16, 128>}, {pipeline_mode = #tpu.pipeline_mode<synchronous>, transform_indices = @transform_1, window_bounds = array<i64: 128, 128>}, {pipeline_mode = #tpu.pipeline_mode<synchronous>, transform_indices = @transform_2, window_bounds = array<i64: 1, 128>}, {pipeline_mode = #tpu.pipeline_mode<synchronous>, transform_indices = @transform_3, window_bounds = array<i64: 1, 128>}, {transform_indices = @transform_4, window_bounds = array<i64: 1, 1>}, {transform_indices = @transform_5, window_bounds = array<i64: 16, 1>}]} {
    %c0 = arith.constant 0 : index
    %c0_0 = arith.constant 0 : index
    %0 = vector.load %arg1[%c0, %c0_0] : memref<16x128xbf16, #tpu.memory_space<vmem>>, vector<16x128xbf16>
    %c0_1 = arith.constant 0 : index
    %c0_2 = arith.constant 0 : index
    %1 = vector.load %arg2[%c0_1, %c0_2] : memref<128x128xbf16, #tpu.memory_space<vmem>>, vector<128x128xbf16>
    %cst = arith.constant dense<0.000000e+00> : vector<16x128xf32>
    %2 = tpu.matmul %0, %1, %cst {dimension_numbers = #tpu.dot_dimension_numbers<[1], [0], [0], [1], [0, 0, 1, 1], [], []>} : vector<16x128xbf16>, vector<128x128xbf16>, vector<16x128xf32> -> vector<16x128xf32>
    %c0_3 = arith.constant 0 : index
    %c0_4 = arith.constant 0 : index
    %3 = vector.load %arg3[%c0_3, %c0_4] : memref<1x128xf32, #tpu.memory_space<vmem>>, vector<1x128xf32>
    %4 = vector.broadcast %3 : vector<1x128xf32> to vector<16x128xf32>
    %5 = arith.addf %2, %4 : vector<16x128xf32>
    %cst_5 = arith.constant 0.000000e+00 : f32
    %6 = vector.broadcast %cst_5 : f32 to vector<16x128xf32>
    %7 = arith.maximumf %5, %6 : vector<16x128xf32>
    %c0_6 = arith.constant 0 : index
    %c0_7 = arith.constant 0 : index
    %8 = vector.load %arg4[%c0_6, %c0_7] : memref<1x128xf32, #tpu.memory_space<vmem>>, vector<1x128xf32>
    %9 = vector.broadcast %8 : vector<1x128xf32> to vector<16x128xf32>
    %10 = arith.mulf %7, %9 : vector<16x128xf32>
    %cst_8 = arith.constant dense<0.000000e+00> : vector<16xf32>
    %11 = vector.multi_reduction <add>, %10, %cst_8 [1] : vector<16x128xf32> to vector<16xf32>
    %12 = vector.shape_cast %11 : vector<16xf32> to vector<16x1xf32>
    %c0_9 = arith.constant 0 : index
    %c0_10 = arith.constant 0 : index
    %13 = memref.load %arg5[%c0_9, %c0_10] : memref<1x1xf32, #tpu.memory_space<smem>>
    %14 = vector.broadcast %13 : f32 to vector<16x1xf32>
    %15 = arith.addf %12, %14 : vector<16x1xf32>
    %16 = math.absf %15 : vector<16x1xf32>
    %cst_11 = arith.constant 0.000000e+00 : f32
    %17 = vector.broadcast %cst_11 : f32 to vector<16x1xf32>
    %18 = arith.subf %17, %16 : vector<16x1xf32>
    %19 = math.exp %18 : vector<16x1xf32>
    %cst_12 = arith.constant 0.000000e+00 : f32
    %20 = vector.broadcast %cst_12 : f32 to vector<16x1xf32>
    %21 = arith.cmpf oge, %15, %20 : vector<16x1xf32>
    %cst_13 = arith.constant 1.000000e+00 : f32
    %22 = vector.broadcast %cst_13 : f32 to vector<16x1xf32>
    %23 = arith.select %21, %22, %19 : vector<16x1xi1>, vector<16x1xf32>
    %cst_14 = arith.constant 1.000000e+00 : f32
    %24 = vector.broadcast %cst_14 : f32 to vector<16x1xf32>
    %25 = arith.addf %24, %19 : vector<16x1xf32>
    %26 = tpu.reciprocal %25 : vector<16x1xf32> -> vector<16x1xf32>
    %27 = arith.mulf %23, %26 : vector<16x1xf32>
    %c0_15 = arith.constant 0 : index
    %c0_16 = arith.constant 0 : index
    %28 = vector.load %arg6[%c0_15, %c0_16] : memref<16x1xf32, #tpu.memory_space<vmem>>, vector<16x1xf32>
    tpu.vector_store %arg6[%c0_15, %c0_16], %27 {strides = array<i32>} : memref<16x1xf32, #tpu.memory_space<vmem>>, vector<16x1xf32>,
    return
  }
  func.func @transform_0(%arg0: i32) -> (i32, i32) {
    %c0_i32 = arith.constant 0 : i32
    %c0_i32_0 = arith.constant 0 : i32
    return %arg0, %c0_i32 : i32, i32
  }
  func.func @transform_1(%arg0: i32) -> (i32, i32) {
    %c0_i32 = arith.constant 0 : i32
    %c0_i32_0 = arith.constant 0 : i32
    %c0_i32_1 = arith.constant 0 : i32
    return %c0_i32, %c0_i32_0 : i32, i32
  }
  func.func @transform_2(%arg0: i32) -> (i32, i32) {
    %c0_i32 = arith.constant 0 : i32
    %c0_i32_0 = arith.constant 0 : i32
    %c0_i32_1 = arith.constant 0 : i32
    return %c0_i32, %c0_i32_0 : i32, i32
  }
  func.func @transform_3(%arg0: i32) -> (i32, i32) {
    %c0_i32 = arith.constant 0 : i32
    %c0_i32_0 = arith.constant 0 : i32
    %c0_i32_1 = arith.constant 0 : i32
    return %c0_i32, %c0_i32_0 : i32, i32
  }
  func.func @transform_4(%arg0: i32) -> (i32, i32) {
    %c0_i32 = arith.constant 0 : i32
    %c0_i32_0 = arith.constant 0 : i32
    %c0_i32_1 = arith.constant 0 : i32
    return %c0_i32, %c0_i32_0 : i32, i32
  }
  func.func @transform_5(%arg0: i32) -> (i32, i32) {
    %c0_i32 = arith.constant 0 : i32
    %c0_i32_0 = arith.constant 0 : i32
    return %arg0, %c0_i32 : i32, i32
  }
}

</mosaic_0001>

<bundles_post_ra>
// kernel: tpu_custom_call.1
= control target key start
LH: loop header
LB: loop body
LE: loop exit
PB: predicated region body
PF: predicated region fallthrough
CT: control target
= control target key end

     0   :  { %11 = vsyncpa [#allocation4], 0  ;;  %s402_s0 = inlined_call_operand.hbm [shape: bf16[16,128], index: 0, kind: input, shape index: {}]   ;;  %s403_s1 = inlined_call_operand.hbm [shape: bf16[128,128], index: 1, kind: input, shape index: {}]   ;;  %s404_s2 = inlined_call_operand.vmem [shape: f32[1,128], index: 2, kind: input, shape index: {}]   ;;  %s405_s3 = inlined_call_operand.vmem [shape: f32[1,128], index: 3, kind: input, shape index: {}]   ;;  %s406_s4 = inlined_call_operand.<no memory space> [shape: f32[1,1], index: 4, kind: input, shape index: {}]   ;;  %s407_s5 = inlined_call_operand.vmem [shape: f32[16,1], index: 5, kind: output, shape index: {}]  }
   0x1   :  { %12 = vsyncpa [#allocation6], 0  ;;  %s327_s18 = smov [#allocation3]   ;;  %s279_s22 = scalar_lea.hbm %s402_s0, 128 }
   0x2   :  { %s18_s19 = sshll.u32 %s327_s18, 4  ;;  %p280_p0 = scmp.ne.s32.totalorder %s402_s0, %s279_s22  ;;  %s19_s19 = int_to_ptr.vmem [resolvable:$true] %s18_s19 }
   0x3   :  { %p283_p1 = scmp.lt.u32.totalorder %s279_s22, %s402_s0 }
   0x5   :  { %p285_p2 = pnand %p283_p1, %p280_p0 }
   0x7   :  { %288 = shalt.err (!%p285_p2)
}
   0x8   :  { %s289_s27 = scalar_lea.vmem %s19_s19, 128  ;;  %p294_p4 = scmp.lt.s32.totalorder %s19_s19, %s19_s19 }
   0x9   :  { %p290_p3 = scmp.ne.s32.totalorder %s19_s19, %s289_s27  ;;  %p295_p5 = scmp.lt.s32.totalorder %s289_s27, %s289_s27 }
   0xb   :  { %p296_p6 = por %p295_p5, %p294_p4 }
   0xd   :  { %p297_p7 = pnand %p296_p6, %p290_p3 }
   0xf   :  { %300 = shalt.err (!%p297_p7)
}
  0x10   :  { %s328_s28 = smov 64   ;;  %s329_s29 = smov 4  }
  0x11   :  { %24 = dma.hbm_to_vmem [thread:$0]  %s402_s0, 128, %s19_s19, [#allocation4], %s328_s28, %s328_s28, %s329_s29  }
  0x12   :  { %s330_s7 = smov [#allocation5]   ;;  %s301_s11 = scalar_lea.hbm %s403_s1, 1024 }
  0x13   :  { %s30_s8 = sshll.u32 %s330_s7, 4  ;;  %p302_p8 = scmp.ne.s32.totalorder %s403_s1, %s301_s11  ;;  %s31_s8 = int_to_ptr.vmem [resolvable:$true] %s30_s8 }
  0x14   :  { %p305_p9 = scmp.lt.u32.totalorder %s301_s11, %s403_s1 }
  0x16   :  { %p307_p10 = pnand %p305_p9, %p302_p8 }
  0x18   :  { %310 = shalt.err (!%p307_p10)
}
  0x19   :  { %s311_s16 = scalar_lea.vmem %s31_s8, 1024  ;;  %p316_p12 = scmp.lt.s32.totalorder %s31_s8, %s31_s8 }
  0x1a   :  { %p312_p11 = scmp.ne.s32.totalorder %s31_s8, %s311_s16  ;;  %p317_p13 = scmp.lt.s32.totalorder %s311_s16, %s311_s16 }
  0x1c   :  { %p318_p0 = por %p317_p13, %p316_p12 }
  0x1e   :  { %p319_p1 = pnand %p318_p0, %p312_p11 }
  0x20   :  { %322 = shalt.err (!%p319_p1)
}
  0x21   :  { %36 = dma.hbm_to_vmem [thread:$0]  %s403_s1, 1024, %s31_s8, [#allocation6], %s328_s28, %s328_s28, %s329_s29  }
  0x22   :  { %323 = dma.done.wait [#allocation4], 128  }
  0x23   :  { %324 = vsyncadd [#allocation4], 4294967168 }
  0x24   :  { %325 = dma.done.wait [#allocation6], 1024  }
  0x25   :  { %326 = vsyncadd [#allocation6], 4294966272  ;;  %v331_v0 = vmov 0.0   ;;  %vm332_vm0 = vmmov 0   ;;  %v262_v1 = vld [vmem:[#allocation5] sm:$0xff]   ;;  %v263_v2 = vld [vmem:[#allocation5 + $0x8] sm:$0xff]   ;;  %v186_v22 = vstv %s406_s4 }
  0x26   :  { %236 = vmatprep.subr.bf16.mxu0 %v331_v0  ;;  %252 = vmatprep.mubr.msk.bf16.mxu0 %vm332_vm0, %v331_v0  ;;  %v264_v3 = vld [vmem:[#allocation5 + $0x10] sm:$0xff]   ;;  %v265_v4 = vld [vmem:[#allocation5 + $0x18] sm:$0xff]   ;;  %v266_v5 = vld [vmem:[#allocation5 + $0x20] sm:$0xff]   ;;  %vm207_vm2 = vcmask 7168  }
  0x27   :  { %237 = vmatpush3.bf16.msra.mxu0 %v262_v1  ;;  %v267_v6 = vld [vmem:[#allocation5 + $0x28] sm:$0xff]   ;;  %v268_v7 = vld [vmem:[#allocation5 + $0x30] sm:$0xff]   ;;  %v269_v8 = vld [vmem:[#allocation5 + $0x38] sm:$0xff]  }
  0x28   :  { %238 = vmatprep.subr.bf16.mxu0 %v331_v0  ;;  %v270_v9 = vld [vmem:[#allocation3] sm:$0xff]  }
  0x29   :  { %v216_v10 = vld [vmem:[%s404_s2] ss:$0 sm:$0xff] }
  0x2a   :  { %v226_v15 = vld [vmem:[%s405_s3] ss:$0 sm:$0xff] }
  0x2b   :  { %239 = vmatpush3.bf16.msra.mxu0 %v263_v2 }
  0x2c   :  { %240 = vmatprep.subr.bf16.mxu0 %v331_v0 }
  0x2f   :  { %241 = vmatpush3.bf16.msra.mxu0 %v264_v3 }
  0x30   :  { %242 = vmatprep.subr.bf16.mxu0 %v331_v0 }
  0x33   :  { %243 = vmatpush3.bf16.msra.mxu0 %v265_v4 }
  0x34   :  { %244 = vmatprep.subr.bf16.mxu0 %v331_v0 }
  0x37   :  { %245 = vmatpush3.bf16.msra.mxu0 %v266_v5 }
  0x38   :  { %246 = vmatprep.subr.bf16.mxu0 %v331_v0 }
  0x3b   :  { %247 = vmatpush3.bf16.msra.mxu0 %v267_v6 }
  0x3c   :  { %248 = vmatprep.subr.bf16.mxu0 %v331_v0 }
  0x3f   :  { %249 = vmatpush3.bf16.msra.mxu0 %v268_v7 }
  0x40   :  { %250 = vmatprep.subr.bf16.mxu0 %v331_v0 }
  0x43   :  { %251 = vmatpush3.bf16.msra.mxu0 %v269_v8 }
  0x46   :  { %253 = vmatmul.mubr.bf16.vlgmr.msra.gmra.mrb[0].mxu0 %v270_v9 }
 0x119   :  { %v163_v11 = vpop.f32.mrb[0].mxu0 }
 0x11a   :  { %v164_v12 = vadd.f32 %v216_v10, %v163_v11  ;;  %v254_v13 = vpop.f32.mrb[1].mxu0 }
 0x11b   :  { %v166_v14 = vpop.f32.mrb[2].mxu0 }
 0x11c   :  { %v170_v16 = vmax.f32 %v164_v12, 0.0  ;;  %v167_v17 = vadd.f32 %v216_v10, %v166_v14  ;;  %v255_v18 = vpop.f32.mrb[3].mxu0 }
 0x11e   :  { %v171_v19 = vmax.f32 %v167_v17, 0.0  ;;  %v179_v20 = vmul.f32 %v226_v15, %v170_v16 }
 0x120   :  { %181 = vadd.xlane.f32.xlu0 %v179_v20  ;;  %v180_v21 = vmul.f32 %v226_v15, %v171_v19 }
 0x124   :  { %183 = vadd.xlane.f32.xlu0 %v180_v21 }
 0x1ad   :  { %v182_v23 = vpop.xlane.xlu0 %181 }
 0x1ae   :  { %v187_v24 = vadd.f32 %v186_v22, %v182_v23 }
 0x1b0   :  { %v189_v25 = vand.u32 2147483647, %v187_v24  ;;  %vm197_vm1 = vcmp.ge.f32.partialorder %v187_v24, 0.0 }
 0x1b1   :  { %v184_v26 = vpop.xlane.xlu0 %183 }
 0x1b2   :  { %v191_v27 = vsub.f32 0.0, %v189_v25  ;;  %v188_v28 = vadd.f32 %v186_v22, %v184_v26 }
 0x1b4   :  { %v193_v29 = vmul.f32 1.442695, %v191_v27  ;;  %v190_v30 = vand.u32 2147483647, %v188_v28  ;;  %vm198_vm3 = vcmp.ge.f32.partialorder %v188_v28, 0.0 }
 0x1b6   :  { %271 = vpow2.f32 %v193_v29  ;;  %v192_v31 = vsub.f32 0.0, %v190_v30 }
 0x1b8   :  { %v195_v32 = vmul.f32 1.442695, %v192_v31 }
 0x1ba   :  { %273 = vpow2.f32 %v195_v32 }
 0x1c0   :  { %v272_v33 = vpop.eup %271 }
 0x1c1   :  { %v201_v34 = vadd.f32 1.0, %v272_v33  ;;  %v199_v38 = vsel %vm197_vm1, 1.0, %v272_v33 }
 0x1c3   :  { %275 = vrcp.f32 %v201_v34 }
 0x1c4   :  { %v274_v35 = vpop.eup %273 }
 0x1c5   :  { %v202_v36 = vadd.f32 1.0, %v274_v35  ;;  %v200_v41 = vsel %vm198_vm3, 1.0, %v274_v35 }
 0x1c7   :  { %277 = vrcp.f32 %v202_v36 }
 0x1cd   :  { %v276_v37 = vpop.eup %275 }
 0x1ce   :  { %v205_v39 = vmul.f32 %v276_v37, %v199_v38 }
 0x1d0   :  { %208 = vst.msk [vmem:[%s407_s5] sm:$0xff] %vm207_vm2, %v205_v39 }
 0x1d1   :  { %v278_v40 = vpop.eup %277 }
 0x1d2   :  { %v206_v42 = vmul.f32 %v278_v40, %v200_v41 }
 0x1d4   :  { %209 = vst.msk [vmem:[%s407_s5 + $0x8] sm:$0xff] %vm207_vm2, %v206_v42 }
 0x1d5   :  { %214 = vsyncpa [#allocation4], 1 }
 0x1d6   :  { %215 = vsyncpa [#allocation6], 1 }

// kernel: tpu_custom_call.1
= control target key start
LH: loop header
LB: loop body
LE: loop exit
PB: predicated region body
PF: predicated region fallthrough
CT: control target
= control target key end

     0   :  { %11 = vsyncpa [#allocation4], 0  ;;  %s402_s0 = inlined_call_operand.hbm [shape: bf16[16,128], index: 0, kind: input, shape index: {}]   ;;  %s403_s1 = inlined_call_operand.hbm [shape: bf16[128,128], index: 1, kind: input, shape index: {}]   ;;  %s404_s2 = inlined_call_operand.vmem [shape: f32[1,128], index: 2, kind: input, shape index: {}]   ;;  %s405_s3 = inlined_call_operand.vmem [shape: f32[1,128], index: 3, kind: input, shape index: {}]   ;;  %s406_s4 = inlined_call_operand.<no memory space> [shape: f32[1,1], index: 4, kind: input, shape index: {}]   ;;  %s407_s5 = inlined_call_operand.vmem [shape: f32[16,1], index: 5, kind: output, shape index: {}]  }
   0x1   :  { %12 = vsyncpa [#allocation6], 0  ;;  %s327_s18 = smov [#allocation3]   ;;  %s279_s22 = scalar_lea.hbm %s402_s0, 128 }
   0x2   :  { %s18_s19 = sshll.u32 %s327_s18, 4  ;;  %p280_p0 = scmp.ne.s32.totalorder %s402_s0, %s279_s22  ;;  %s19_s19 = int_to_ptr.vmem [resolvable:$true] %s18_s19 }
   0x3   :  { %p283_p1 = scmp.lt.u32.totalorder %s279_s22, %s402_s0 }
   0x5   :  { %p285_p2 = pnand %p283_p1, %p280_p0 }
   0x7   :  { %288 = shalt.err (!%p285_p2)
}
   0x8   :  { %s289_s27 = scalar_lea.vmem %s19_s19, 128  ;;  %p294_p4 = scmp.lt.s32.totalorder %s19_s19, %s19_s19 }
   0x9   :  { %p290_p3 = scmp.ne.s32.totalorder %s19_s19, %s289_s27  ;;  %p295_p5 = scmp.lt.s32.totalorder %s289_s27, %s289_s27 }
   0xb   :  { %p296_p6 = por %p295_p5, %p294_p4 }
   0xd   :  { %p297_p7 = pnand %p296_p6, %p290_p3 }
   0xf   :  { %300 = shalt.err (!%p297_p7)
}
  0x10   :  { %s328_s28 = smov 64   ;;  %s329_s29 = smov 4  }
  0x11   :  { %24 = dma.hbm_to_vmem [thread:$0]  %s402_s0, 128, %s19_s19, [#allocation4], %s328_s28, %s328_s28, %s329_s29  }
  0x12   :  { %s330_s7 = smov [#allocation5]   ;;  %s301_s11 = scalar_lea.hbm %s403_s1, 1024 }
  0x13   :  { %s30_s8 = sshll.u32 %s330_s7, 4  ;;  %p302_p8 = scmp.ne.s32.totalorder %s403_s1, %s301_s11  ;;  %s31_s8 = int_to_ptr.vmem [resolvable:$true] %s30_s8 }
  0x14   :  { %p305_p9 = scmp.lt.u32.totalorder %s301_s11, %s403_s1 }
  0x16   :  { %p307_p10 = pnand %p305_p9, %p302_p8 }
  0x18   :  { %310 = shalt.err (!%p307_p10)
}
  0x19   :  { %s311_s16 = scalar_lea.vmem %s31_s8, 1024  ;;  %p316_p12 = scmp.lt.s32.totalorder %s31_s8, %s31_s8 }
  0x1a   :  { %p312_p11 = scmp.ne.s32.totalorder %s31_s8, %s311_s16  ;;  %p317_p13 = scmp.lt.s32.totalorder %s311_s16, %s311_s16 }
  0x1c   :  { %p318_p0 = por %p317_p13, %p316_p12 }
  0x1e   :  { %p319_p1 = pnand %p318_p0, %p312_p11 }
  0x20   :  { %322 = shalt.err (!%p319_p1)
}
  0x21   :  { %36 = dma.hbm_to_vmem [thread:$0]  %s403_s1, 1024, %s31_s8, [#allocation6], %s328_s28, %s328_s28, %s329_s29  }
  0x22   :  { %323 = dma.done.wait [#allocation4], 128  }
  0x23   :  { %324 = vsyncadd [#allocation4], 4294967168 }
  0x24   :  { %325 = dma.done.wait [#allocation6], 1024  }
  0x25   :  { %326 = vsyncadd [#allocation6], 4294966272  ;;  %v331_v0 = vmov 0.0   ;;  %vm332_vm0 = vmmov 0   ;;  %v262_v1 = vld [vmem:[#allocation5] sm:$0xff]   ;;  %v263_v2 = vld [vmem:[#allocation5 + $0x8] sm:$0xff]   ;;  %v186_v22 = vstv %s406_s4 }
  0x26   :  { %236 = vmatprep.subr.bf16.mxu0 %v331_v0  ;;  %252 = vmatprep.mubr.msk.bf16.mxu0 %vm332_vm0, %v331_v0  ;;  %v264_v3 = vld [vmem:[#allocation5 + $0x10] sm:$0xff]   ;;  %v265_v4 = vld [vmem:[#allocation5 + $0x18] sm:$0xff]   ;;  %v266_v5 = vld [vmem:[#allocation5 + $0x20] sm:$0xff]   ;;  %vm207_vm2 = vcmask 7168  }
  0x27   :  { %237 = vmatpush3.bf16.msra.mxu0 %v262_v1  ;;  %v267_v6 = vld [vmem:[#allocation5 + $0x28] sm:$0xff]   ;;  %v268_v7 = vld [vmem:[#allocation5 + $0x30] sm:$0xff]   ;;  %v269_v8 = vld [vmem:[#allocation5 + $0x38] sm:$0xff]  }
  0x28   :  { %238 = vmatprep.subr.bf16.mxu0 %v331_v0  ;;  %v270_v9 = vld [vmem:[#allocation3] sm:$0xff]  }
  0x29   :  { %v216_v10 = vld [vmem:[%s404_s2] ss:$0 sm:$0xff] }
  0x2a   :  { %v226_v15 = vld [vmem:[%s405_s3] ss:$0 sm:$0xff] }
  0x2b   :  { %239 = vmatpush3.bf16.msra.mxu0 %v263_v2 }
  0x2c   :  { %240 = vmatprep.subr.bf16.mxu0 %v331_v0 }
  0x2f   :  { %241 = vmatpush3.bf16.msra.mxu0 %v264_v3 }
  0x30   :  { %242 = vmatprep.subr.bf16.mxu0 %v331_v0 }
  0x33   :  { %243 = vmatpush3.bf16.msra.mxu0 %v265_v4 }
  0x34   :  { %244 = vmatprep.subr.bf16.mxu0 %v331_v0 }
  0x37   :  { %245 = vmatpush3.bf16.msra.mxu0 %v266_v5 }
  0x38   :  { %246 = vmatprep.subr.bf16.mxu0 %v331_v0 }
  0x3b   :  { %247 = vmatpush3.bf16.msra.mxu0 %v267_v6 }
  0x3c   :  { %248 = vmatprep.subr.bf16.mxu0 %v331_v0 }
  0x3f   :  { %249 = vmatpush3.bf16.msra.mxu0 %v268_v7 }
  0x40   :  { %250 = vmatprep.subr.bf16.mxu0 %v331_v0 }
  0x43   :  { %251 = vmatpush3.bf16.msra.mxu0 %v269_v8 }
  0x46   :  { %253 = vmatmul.mubr.bf16.vlgmr.msra.gmra.mrb[0].mxu0 %v270_v9 }
 0x119   :  { %v163_v11 = vpop.f32.mrb[0].mxu0 }
 0x11a   :  { %v164_v12 = vadd.f32 %v216_v10, %v163_v11  ;;  %v254_v13 = vpop.f32.mrb[1].mxu0 }
 0x11b   :  { %v166_v14 = vpop.f32.mrb[2].mxu0 }
 0x11c   :  { %v170_v16 = vmax.f32 %v164_v12, 0.0  ;;  %v167_v17 = vadd.f32 %v216_v10, %v166_v14  ;;  %v255_v18 = vpop.f32.mrb[3].mxu0 }
 0x11e   :  { %v171_v19 = vmax.f32 %v167_v17, 0.0  ;;  %v179_v20 = vmul.f32 %v226_v15, %v170_v16 }
 0x120   :  { %181 = vadd.xlane.f32.xlu0 %v179_v20  ;;  %v180_v21 = vmul.f32 %v226_v15, %v171_v19 }
 0x124   :  { %183 = vadd.xlane.f32.xlu0 %v180_v21 }
 0x1ad   :  { %v182_v23 = vpop.xlane.xlu0 %181 }
 0x1ae   :  { %v187_v24 = vadd.f32 %v186_v22, %v182_v23 }
 0x1b0   :  { %v189_v25 = vand.u32 2147483647, %v187_v24  ;;  %vm197_vm1 = vcmp.ge.f32.partialorder %v187_v24, 0.0 }
 0x1b1   :  { %v184_v26 = vpop.xlane.xlu0 %183 }
 0x1b2   :  { %v191_v27 = vsub.f32 0.0, %v189_v25  ;;  %v188_v28 = vadd.f32 %v186_v22, %v184_v26 }
 0x1b4   :  { %v193_v29 = vmul.f32 1.442695, %v191_v27  ;;  %v190_v30 = vand.u32 2147483647, %v188_v28  ;;  %vm198_vm3 = vcmp.ge.f32.partialorder %v188_v28, 0.0 }
 0x1b6   :  { %271 = vpow2.f32 %v193_v29  ;;  %v192_v31 = vsub.f32 0.0, %v190_v30 }
 0x1b8   :  { %v195_v32 = vmul.f32 1.442695, %v192_v31 }
 0x1ba   :  { %273 = vpow2.f32 %v195_v32 }
 0x1c0   :  { %v272_v33 = vpop.eup %271 }
 0x1c1   :  { %v201_v34 = vadd.f32 1.0, %v272_v33  ;;  %v199_v38 = vsel %vm197_vm1, 1.0, %v272_v33 }
 0x1c3   :  { %275 = vrcp.f32 %v201_v34 }
 0x1c4   :  { %v274_v35 = vpop.eup %273 }
 0x1c5   :  { %v202_v36 = vadd.f32 1.0, %v274_v35  ;;  %v200_v41 = vsel %vm198_vm3, 1.0, %v274_v35 }
 0x1c7   :  { %277 = vrcp.f32 %v202_v36 }
 0x1cd   :  { %v276_v37 = vpop.eup %275 }
 0x1ce   :  { %v205_v39 = vmul.f32 %v276_v37, %v199_v38 }
 0x1d0   :  { %208 = vst.msk [vmem:[%s407_s5] sm:$0xff] %vm207_vm2, %v205_v39 }
 0x1d1   :  { %v278_v40 = vpop.eup %277 }
 0x1d2   :  { %v206_v42 = vmul.f32 %v278_v40, %v200_v41 }
 0x1d4   :  { %209 = vst.msk [vmem:[%s407_s5 + $0x8] sm:$0xff] %vm207_vm2, %v206_v42 }
 0x1d5   :  { %214 = vsyncpa [#allocation4], 1 }
 0x1d6   :  { %215 = vsyncpa [#allocation6], 1 }

</bundles_post_ra>
